<compile_context>
chip_gen: v7x
topology: tpu7x:2x2x1
jax: 0.10.0
libtpu: 0.0.40
codegen_flags: <defaults>
</compile_context>

<pallas_src>
import functools

import jax
import jax.numpy as jnp
from jax.experimental import pallas as pl
from jax.experimental.pallas import tpu as pltpu


def _round_up(x, m):
    return (x + m - 1) // m * m


# ----------------------------- Pallas kernel --------------------------------
def _ql1_kernel(x_ref, w_ref, ein_ref, nout_ref, b_ref, o_ref, *, apply_relu):
    # x_ref   : [tb, F_in]          bf16
    # w_ref   : [F_in, F_out_pad]   bf16   (concatenated encoder mu-weights)
    # ein_ref : [F_in, E_pad]       bf16   (per-encoder factorized eps_in)
    # nout_ref: [E_pad, F_out_pad]  f32    (sigma * eps_out, per-encoder rows)
    # b_ref   : [1, F_out_pad]      f32    (mu bias + sigma*eps_out bias noise)
    x = x_ref[...]

    # Main matmul: bf16 operands, f32 accumulation on the MXU.
    y = jnp.dot(x, w_ref[...], preferred_element_type=jnp.float32)

    # Rank-1 factorized-noise correction:
    #   y += (x @ eps_in) @ (sigma * eps_out)    -- both factors are tiny.
    z = jnp.dot(x, ein_ref[...], preferred_element_type=jnp.float32)        # [tb, E_pad]
    y = y + jnp.dot(z, nout_ref[...], preferred_element_type=jnp.float32)   # [tb, F_out_pad]

    y = y + b_ref[...]
    if apply_relu:
        y = jnp.maximum(y, 0.0)
    o_ref[...] = y.astype(o_ref.dtype)


# --------------------- one-time parameter precompute -------------------------
def _noise_f(x):
    # factorized Gaussian noise transform used by NoisyLinear
    return jnp.sign(x) * jnp.sqrt(jnp.abs(x))


def make_noisy_linear(key, in_f, out_f, sigma0=0.5):
    """Raw NoisyLinear parameters + factorized noise buffers (PyTorch init)."""
    k1, k2, k3, k4 = jax.random.split(key, 4)
    bound = float(in_f) ** -0.5
    w_mu = jax.random.uniform(k1, (out_f, in_f), minval=-bound, maxval=bound,
                              dtype=jnp.float32)
    b_mu = jax.random.uniform(k2, (out_f,), minval=-bound, maxval=bound,
                              dtype=jnp.float32)
    sigma = sigma0 * float(in_f) ** -0.5        # NoisyLinear sigma init value
    eps_in = _noise_f(jax.random.normal(k3, (in_f,), dtype=jnp.float32))
    eps_out = _noise_f(jax.random.normal(k4, (out_f,), dtype=jnp.float32))
    return dict(w_mu=w_mu, b_mu=b_mu, sigma=sigma, eps_in=eps_in, eps_out=eps_out)


def precompute_ql1_params(encoders, noisy, *, e_pad=8, lane=128):
    """Build the fused / padded kernel operands ONCE (hoisted off the forward
    path).  Only the tiny eps_in / noise_out / bias tensors need rebuilding
    when the factorized noise is resampled."""
    F_in = encoders[0]["w_mu"].shape[1]
    outs = [e["w_mu"].shape[0] for e in encoders]
    F_out = sum(outs)
    F_out_pad = _round_up(F_out, lane)          # lane-dense output (>=128)
    assert len(encoders) <= e_pad

    w_mu_cat = jnp.zeros((F_in, F_out_pad), jnp.float32)
    b_cat = jnp.zeros((1, F_out_pad), jnp.float32)
    eps_in_mat = jnp.zeros((F_in, e_pad), jnp.float32)
    noise_out = jnp.zeros((e_pad, F_out_pad), jnp.float32)

    off = 0
    for e, enc in enumerate(encoders):
        o = enc["w_mu"].shape[0]
        w_mu_cat = w_mu_cat.at[:, off:off + o].set(enc["w_mu"].T)
        b = enc["b_mu"]
        if noisy:
            b = b + enc["sigma"] * enc["eps_out"]                 # bias noise
            eps_in_mat = eps_in_mat.at[:, e].set(enc["eps_in"])
            noise_out = noise_out.at[e, off:off + o].set(enc["sigma"] * enc["eps_out"])
        b_cat = b_cat.at[0, off:off + o].set(b)
        off += o

    params = dict(
        w_mu=w_mu_cat.astype(jnp.bfloat16),     # bf16 weights -> half the DMA bytes
        eps_in=eps_in_mat.astype(jnp.bfloat16),
        noise_out=noise_out,                    # f32, tiny
        bias=b_cat,                             # f32, tiny
    )
    return params, F_out


# ------------------------------- forward -------------------------------------
def ql1_head_forward(x_nchw, params, f_out, apply_relu, *,
                     sublane=8, batch_tile=128):
    """QL1Head.forward.  x_nchw: [B, C, H, W]; returns [B, f_out] f32."""
    B = x_nchw.shape[0]
    x = x_nchw.reshape(B, -1).astype(jnp.bfloat16)      # flatten(-3,-1), bf16 for MXU
    B_pad = _round_up(max(B, 1), sublane)               # fill vreg sublanes
    if B_pad != B:
        x = jnp.pad(x, ((0, B_pad - B), (0, 0)))

    w, ein, nout, b = params["w_mu"], params["eps_in"], params["noise_out"], params["bias"]
    F_in = x.shape[1]
    F_out_pad = w.shape[1]
    E_pad = ein.shape[1]

    flops = 2 * B_pad * F_in * F_out_pad \
        + 2 * B_pad * F_in * E_pad + 2 * B_pad * E_pad * F_out_pad
    bytes_accessed = (x.size * x.dtype.itemsize + w.size * w.dtype.itemsize
                      + ein.size * ein.dtype.itemsize + nout.size * nout.dtype.itemsize
                      + b.size * b.dtype.itemsize + B_pad * F_out_pad * 4)
    cost = pl.CostEstimate(flops=flops, transcendentals=0,
                           bytes_accessed=bytes_accessed)

    kernel = functools.partial(_ql1_kernel, apply_relu=apply_relu)
    out_shape = jax.ShapeDtypeStruct((B_pad, F_out_pad), jnp.float32)

    if B_pad <= batch_tile:
        # Small batch: single no-grid invocation, all operands VMEM-resident
        # (avoids a pointless 1-step pipeline + extra double buffers).
        out = pl.pallas_call(
            kernel,
            out_shape=out_shape,
            in_specs=[pl.BlockSpec(memory_space=pltpu.MemorySpace.VMEM)] * 5,
            out_specs=pl.BlockSpec(memory_space=pltpu.MemorySpace.VMEM),
            cost_estimate=cost,
        )(x, w, ein, nout, b)
    else:
        # Large batch: tile B on a parallel grid axis (v7x shards tiles across
        # its two TensorCores).  Weight / noise / bias blocks keep a constant
        # block index -> they stay resident in VMEM across the whole grid.
        assert B_pad % batch_tile == 0
        grid = (B_pad // batch_tile,)
        out = pl.pallas_call(
            kernel,
            out_shape=out_shape,
            grid=grid,
            in_specs=[
                pl.BlockSpec((batch_tile, F_in), lambda i: (i, 0)),
                pl.BlockSpec((F_in, F_out_pad), lambda i: (0, 0)),
                pl.BlockSpec((F_in, E_pad), lambda i: (0, 0)),
                pl.BlockSpec((E_pad, F_out_pad), lambda i: (0, 0)),
                pl.BlockSpec((1, F_out_pad), lambda i: (0, 0)),
            ],
            out_specs=pl.BlockSpec((batch_tile, F_out_pad), lambda i: (i, 0)),
            compiler_params=pltpu.CompilerParams(
                dimension_semantics=("parallel",)),
            cost_estimate=cost,
        )(x, w, ein, nout, b)

    return out[:B, :f_out]                               # drop sublane/lane padding


# -------------------------- pure-JAX reference -------------------------------
def ql1_reference(x_nchw, encoders, noisy, apply_relu):
    x_flat = x_nchw.reshape(x_nchw.shape[0], -1)
    refs = []
    for enc in encoders:
        w_eff = enc["w_mu"]
        b_eff = enc["b_mu"]
        if noisy:
            w_eff = w_eff + enc["sigma"] * jnp.outer(enc["eps_out"], enc["eps_in"])
            b_eff = b_eff + enc["sigma"] * enc["eps_out"]
        refs.append(jnp.dot(x_flat, w_eff.T,
                            precision=jax.lax.Precision.HIGHEST) + b_eff)
    ref = jnp.concatenate(refs, axis=-1)
    if apply_relu:
        ref = jnp.maximum(ref, 0.0)
    return ref


# ---------------------------------- demo ------------------------------------
if __name__ == "__main__":
    # Config mirrors QL1Head(head, dueling=True, type='noisy advantage value'):
    #   two encoders (value hidden + advantage hidden), noise on, no relu.
    key = jax.random.PRNGKey(0)
    kx, kv, ka, kx2 = jax.random.split(key, 4)

    B, C, H, W = 2, 4, 16, 16          # small NCHW conv feature map
    F_in = C * H * W                    # 1024
    value_out, adv_out = 32, 32         # encoder out_features -> F_out = 64
    noisy = True                        # 'noisy' in type
    apply_relu = False                  # 'relu' not in type

    x = jax.random.normal(kx, (B, C, H, W), dtype=jnp.float32)

    encoders = [
        make_noisy_linear(kv, F_in, value_out),
        make_noisy_linear(ka, F_in, adv_out),
    ]
    params, F_out = precompute_ql1_params(encoders, noisy)   # one-time precompute

    # ---- small-batch (no-grid, all-VMEM) path ----
    fwd = jax.jit(functools.partial(ql1_head_forward, f_out=F_out,
                                    apply_relu=apply_relu))
    out = jax.block_until_ready(fwd(x, params))
    ref = ql1_reference(x, encoders, noisy, apply_relu)
    assert out.shape == (B, value_out + adv_out)
    # bf16 operands -> looser tolerance than an f32-only check
    assert jnp.allclose(out, ref, atol=2e-2, rtol=2e-2), "mismatch vs reference (small batch)"

    # ---- batch-tiled grid path (exercised with a tiny tile for coverage) ----
    B2 = 24
    x2 = jax.random.normal(kx2, (B2, C, H, W), dtype=jnp.float32)
    fwd_tiled = jax.jit(functools.partial(ql1_head_forward, f_out=F_out,
                                          apply_relu=apply_relu, batch_tile=8))
    out2 = jax.block_until_ready(fwd_tiled(x2, params))
    ref2 = ql1_reference(x2, encoders, noisy, apply_relu)
    assert out2.shape == (B2, value_out + adv_out)
    assert jnp.allclose(out2, ref2, atol=2e-2, rtol=2e-2), "mismatch vs reference (tiled batch)"

    print("KERNEL_OK")
</pallas_src>

<mosaic_0001>
module attributes {stable_mosaic.version = 11 : i64} {
  func.func @_ql1_kernel(%arg0: memref<8x1024xbf16, #tpu.memory_space<vmem>>, %arg1: memref<1024x128xbf16, #tpu.memory_space<vmem>>, %arg2: memref<1024x8xbf16, #tpu.memory_space<vmem>>, %arg3: memref<8x128xf32, #tpu.memory_space<vmem>>, %arg4: memref<1x128xf32, #tpu.memory_space<vmem>>, %arg5: memref<8x128xf32, #tpu.memory_space<vmem>>) attributes {dimension_semantics = [], scalar_prefetch = 0 : i64, scratch_operands = 0 : i64, tpu.core_type = #tpu.core_type<tc>} {
    %c0 = arith.constant 0 : index
    %c0_0 = arith.constant 0 : index
    %0 = vector.load %arg0[%c0, %c0_0] : memref<8x1024xbf16, #tpu.memory_space<vmem>>, vector<8x1024xbf16>
    %c0_1 = arith.constant 0 : index
    %c0_2 = arith.constant 0 : index
    %1 = vector.load %arg1[%c0_1, %c0_2] : memref<1024x128xbf16, #tpu.memory_space<vmem>>, vector<1024x128xbf16>
    %cst = arith.constant dense<0.000000e+00> : vector<8x128xf32>
    %2 = tpu.matmul %0, %1, %cst {dimension_numbers = #tpu.dot_dimension_numbers<[1], [0], [0], [1], [0, 0, 1, 1], [], []>} : vector<8x1024xbf16>, vector<1024x128xbf16>, vector<8x128xf32> -> vector<8x128xf32>
    %c0_3 = arith.constant 0 : index
    %c0_4 = arith.constant 0 : index
    %3 = vector.load %arg2[%c0_3, %c0_4] : memref<1024x8xbf16, #tpu.memory_space<vmem>>, vector<1024x8xbf16>
    %cst_5 = arith.constant dense<0.000000e+00> : vector<8x8xf32>
    %4 = tpu.matmul %0, %3, %cst_5 {dimension_numbers = #tpu.dot_dimension_numbers<[1], [0], [0], [1], [0, 0, 1, 1], [], []>} : vector<8x1024xbf16>, vector<1024x8xbf16>, vector<8x8xf32> -> vector<8x8xf32>
    %c0_6 = arith.constant 0 : index
    %c0_7 = arith.constant 0 : index
    %5 = vector.load %arg3[%c0_6, %c0_7] : memref<8x128xf32, #tpu.memory_space<vmem>>, vector<8x128xf32>
    %cst_8 = arith.constant dense<0.000000e+00> : vector<8x128xf32>
    %6 = tpu.matmul %4, %5, %cst_8 {dimension_numbers = #tpu.dot_dimension_numbers<[1], [0], [0], [1], [0, 0, 1, 1], [], []>} : vector<8x8xf32>, vector<8x128xf32>, vector<8x128xf32> -> vector<8x128xf32>
    %7 = arith.addf %2, %6 : vector<8x128xf32>
    %c0_9 = arith.constant 0 : index
    %c0_10 = arith.constant 0 : index
    %8 = vector.load %arg4[%c0_9, %c0_10] : memref<1x128xf32, #tpu.memory_space<vmem>>, vector<1x128xf32>
    %9 = vector.broadcast %8 : vector<1x128xf32> to vector<8x128xf32>
    %10 = arith.addf %7, %9 : vector<8x128xf32>
    %c0_11 = arith.constant 0 : index
    %c0_12 = arith.constant 0 : index
    %11 = vector.load %arg5[%c0_11, %c0_12] : memref<8x128xf32, #tpu.memory_space<vmem>>, vector<8x128xf32>
    tpu.vector_store %arg5[%c0_11, %c0_12], %10 {strides = array<i32>} : memref<8x128xf32, #tpu.memory_space<vmem>>, vector<8x128xf32>,
    return
  }
}

</mosaic_0001>

<bundles_post_ra>
// kernel: ql1_head_forward.1
= control target key start
LH: loop header
LB: loop body
LE: loop exit
PB: predicated region body
PF: predicated region fallthrough
CT: control target
= control target key end

     0   :  { %vm1945_vm0 = vmmov 0   ;;  %vm854_vm1 = vcmask 64512   ;;  %s2409_s2 = inlined_call_operand.vmem [shape: bf16[1024,8], index: 2, kind: input, shape index: {}]   ;;  %s2410_s0 = inlined_call_operand.vmem [shape: bf16[8,1024], index: 0, kind: input, shape index: {}]   ;;  %s2411_s1 = inlined_call_operand.vmem [shape: bf16[1024,128], index: 1, kind: input, shape index: {}]   ;;  %s2412_s3 = inlined_call_operand.vmem [shape: f32[8,128], index: 3, kind: input, shape index: {}]   ;;  %s2413_s4 = inlined_call_operand.vmem [shape: f32[1,128], index: 4, kind: input, shape index: {}]   ;;  %s2414_s5 = inlined_call_operand.vmem [shape: f32[8,128], index: 5, kind: output, shape index: {}]  }
   0x1   :  { %v1808_v0 = vld [vmem:[%s2409_s2 + $0x40] sm:$0xff]   ;;  %v1812_v4 = vld [vmem:[%s2409_s2 + $0x48] sm:$0xff]   ;;  %v1816_v8 = vld [vmem:[%s2409_s2 + $0x50] sm:$0xff]  }
   0x2   :  { %v1809_v1 = vld [vmem:[%s2409_s2 + $0xc0] sm:$0xff]   ;;  %1623 = vmatprep.subr.bf16.mxu0 %v1808_v0  ;;  %v1813_v5 = vld [vmem:[%s2409_s2 + $0xc8] sm:$0xff]   ;;  %v1817_v9 = vld [vmem:[%s2409_s2 + $0xd0] sm:$0xff]  }
   0x3   :  { %v1810_v2 = vld [vmem:[%s2409_s2] sm:$0xff]   ;;  %1645 = vmatprep.subr.bf16.mxu1 %v1809_v1  ;;  %v1814_v6 = vld [vmem:[%s2409_s2 + $0x8] sm:$0xff]   ;;  %v1818_v10 = vld [vmem:[%s2409_s2 + $0x10] sm:$0xff]  }
   0x4   :  { %v1811_v3 = vld [vmem:[%s2409_s2 + $0x80] sm:$0xff]   ;;  %1624 = vmatpush3.bf16.msra.mxu0 %v1810_v2  ;;  %v1815_v7 = vld [vmem:[%s2409_s2 + $0x88] sm:$0xff]   ;;  %v1819_v11 = vld [vmem:[%s2409_s2 + $0x90] sm:$0xff]  }
   0x5   :  { %1646 = vmatpush3.bf16.msra.mxu1 %v1811_v3  ;;  %1625 = vmatprep.subr.bf16.mxu0 %v1812_v4  ;;  %v1820_v12 = vld [vmem:[%s2409_s2 + $0x58] sm:$0xff]   ;;  %v1824_v16 = vld [vmem:[%s2409_s2 + $0x60] sm:$0xff]   ;;  %v1828_v20 = vld [vmem:[%s2409_s2 + $0x68] sm:$0xff]  }
   0x6   :  { %1647 = vmatprep.subr.bf16.mxu1 %v1813_v5  ;;  %v1821_v13 = vld [vmem:[%s2409_s2 + $0xd8] sm:$0xff]   ;;  %v1825_v17 = vld [vmem:[%s2409_s2 + $0xe0] sm:$0xff]   ;;  %v1829_v21 = vld [vmem:[%s2409_s2 + $0xe8] sm:$0xff]  }
   0x7   :  { %v1822_v14 = vld [vmem:[%s2409_s2 + $0x18] sm:$0xff]   ;;  %v1826_v18 = vld [vmem:[%s2409_s2 + $0x20] sm:$0xff]   ;;  %v1830_v22 = vld [vmem:[%s2409_s2 + $0x28] sm:$0xff]  }
   0x8   :  { %1626 = vmatpush3.bf16.msra.mxu0 %v1814_v6  ;;  %v1823_v15 = vld [vmem:[%s2409_s2 + $0x98] sm:$0xff]   ;;  %v1827_v19 = vld [vmem:[%s2409_s2 + $0xa0] sm:$0xff]   ;;  %v1831_v23 = vld [vmem:[%s2409_s2 + $0xa8] sm:$0xff]  }
   0x9   :  { %1648 = vmatpush3.bf16.msra.mxu1 %v1815_v7  ;;  %1627 = vmatprep.subr.bf16.mxu0 %v1816_v8  ;;  %v1832_v24 = vld [vmem:[%s2409_s2 + $0x70] sm:$0xff]   ;;  %v1836_v28 = vld [vmem:[%s2409_s2 + $0x78] sm:$0xff]   ;;  %v21_v32 = vld [vmem:[%s2410_s0] sm:$0xff] }
   0xa   :  { %1649 = vmatprep.subr.bf16.mxu1 %v1817_v9  ;;  %v1833_v25 = vld [vmem:[%s2409_s2 + $0xf0] sm:$0xff]   ;;  %v1837_v29 = vld [vmem:[%s2409_s2 + $0xf8] sm:$0xff]   ;;  %v22_v33 = vld [vmem:[%s2410_s0 + $0x8] sm:$0xff]  ;;  %v2078_v34 = vcombine.low %v21_v32, %v21_v32  ;;  %v2080_v35 = vcombine.high %v21_v32, %v21_v32 }
   0xb   :  { %v1834_v26 = vld [vmem:[%s2409_s2 + $0x30] sm:$0xff]   ;;  %v1838_v30 = vld [vmem:[%s2409_s2 + $0x38] sm:$0xff]   ;;  %v2082_v36 = vcombine.low %v22_v33, %v22_v33  ;;  %v2084_v37 = vcombine.high %v22_v33, %v22_v33  ;;  %v1844_v38 = vld [vmem:[%s2409_s2 + $0x140] sm:$0xff]  }
   0xc   :  { %1628 = vmatpush3.bf16.msra.mxu0 %v1818_v10  ;;  %v1835_v27 = vld [vmem:[%s2409_s2 + $0xb0] sm:$0xff]   ;;  %v1839_v31 = vld [vmem:[%s2409_s2 + $0xb8] sm:$0xff]   ;;  %v1845_v39 = vld [vmem:[%s2409_s2 + $0x1c0] sm:$0xff]   ;;  %725 = vmatprep.mubr.bf16.mxu0 %v2080_v35 }
   0xd   :  { %1650 = vmatpush3.bf16.msra.mxu1 %v1819_v11  ;;  %1629 = vmatprep.subr.bf16.mxu0 %v1820_v12  ;;  %v1846_v40 = vld [vmem:[%s2409_s2 + $0x100] sm:$0xff]   ;;  %v1848_v42 = vld [vmem:[%s2409_s2 + $0x148] sm:$0xff]   ;;  %v1852_v46 = vld [vmem:[%s2409_s2 + $0x150] sm:$0xff]  }
   0xe   :  { %1651 = vmatprep.subr.bf16.mxu1 %v1821_v13  ;;  %765 = vmatprep.mubr.bf16.mxu1 %v2084_v37  ;;  %v1847_v41 = vld [vmem:[%s2409_s2 + $0x180] sm:$0xff]   ;;  %v1849_v43 = vld [vmem:[%s2409_s2 + $0x1c8] sm:$0xff]   ;;  %v1853_v47 = vld [vmem:[%s2409_s2 + $0x1d0] sm:$0xff]  }
   0xf   :  { %v1850_v44 = vld [vmem:[%s2409_s2 + $0x108] sm:$0xff]   ;;  %v1854_v48 = vld [vmem:[%s2409_s2 + $0x110] sm:$0xff]   ;;  %v1856_v50 = vld [vmem:[%s2409_s2 + $0x158] sm:$0xff]  }
  0x10   :  { %1630 = vmatpush3.bf16.msra.mxu0 %v1822_v14  ;;  %v1851_v45 = vld [vmem:[%s2409_s2 + $0x188] sm:$0xff]   ;;  %v1855_v49 = vld [vmem:[%s2409_s2 + $0x190] sm:$0xff]   ;;  %v1857_v51 = vld [vmem:[%s2409_s2 + $0x1d8] sm:$0xff]   ;;  %v1944_v14 = vmov 0.0  }
  0x11   :  { %1652 = vmatpush3.bf16.msra.mxu1 %v1823_v15  ;;  %1631 = vmatprep.subr.bf16.mxu0 %v1824_v16  ;;  %v1858_v52 = vld [vmem:[%s2409_s2 + $0x118] sm:$0xff]   ;;  %v1860_v54 = vld [vmem:[%s2409_s2 + $0x160] sm:$0xff]   ;;  %v1864_v58 = vld [vmem:[%s2409_s2 + $0x168] sm:$0xff]  }
  0x12   :  { %1653 = vmatprep.subr.bf16.mxu1 %v1825_v17  ;;  %v1859_v53 = vld [vmem:[%s2409_s2 + $0x198] sm:$0xff]   ;;  %v1861_v55 = vld [vmem:[%s2409_s2 + $0x1e0] sm:$0xff]   ;;  %v1865_v59 = vld [vmem:[%s2409_s2 + $0x1e8] sm:$0xff]  }
  0x13   :  { %v1862_v56 = vld [vmem:[%s2409_s2 + $0x120] sm:$0xff]   ;;  %v1866_v60 = vld [vmem:[%s2409_s2 + $0x128] sm:$0xff]   ;;  %v1868_v62 = vld [vmem:[%s2409_s2 + $0x170] sm:$0xff]  }
  0x14   :  { %1632 = vmatpush3.bf16.msra.mxu0 %v1826_v18  ;;  %v1863_v57 = vld [vmem:[%s2409_s2 + $0x1a0] sm:$0xff]   ;;  %v1867_v61 = vld [vmem:[%s2409_s2 + $0x1a8] sm:$0xff]   ;;  %v1869_v63 = vld [vmem:[%s2409_s2 + $0x1f0] sm:$0xff]  }
  0x15   :  { %1654 = vmatpush3.bf16.msra.mxu1 %v1827_v19  ;;  %1633 = vmatprep.subr.bf16.mxu0 %v1828_v20  ;;  %v1870_v0 = vld [vmem:[%s2409_s2 + $0x130] sm:$0xff]   ;;  %v1872_v2 = vld [vmem:[%s2409_s2 + $0x178] sm:$0xff]   ;;  %v1880_v12 = vld [vmem:[%s2411_s1 + $0x40] sm:$0xff]  }
  0x16   :  { %1655 = vmatprep.subr.bf16.mxu1 %v1829_v21  ;;  %v1871_v1 = vld [vmem:[%s2409_s2 + $0x1b0] sm:$0xff]   ;;  %v1873_v3 = vld [vmem:[%s2409_s2 + $0x1f8] sm:$0xff]   ;;  %v1881_v13 = vld [vmem:[%s2411_s1] sm:$0xff]  }
  0x17   :  { %v1874_v4 = vld [vmem:[%s2409_s2 + $0x138] sm:$0xff]   ;;  %v23_v6 = vld [vmem:[%s2410_s0 + $0x10] sm:$0xff]  ;;  %v1882_v15 = vld [vmem:[%s2411_s1 + $0x48] sm:$0xff]  }
  0x18   :  { %1634 = vmatpush3.bf16.msra.mxu0 %v1830_v22  ;;  %v1875_v5 = vld [vmem:[%s2409_s2 + $0x1b8] sm:$0xff]   ;;  %v2189_v7 = vcombine.low %v23_v6, %v23_v6  ;;  %v1490_v8 = vcombine.high %v23_v6, %v23_v6  ;;  %v1883_v16 = vld [vmem:[%s2411_s1 + $0x8] sm:$0xff]   ;;  %v1884_v17 = vld [vmem:[%s2411_s1 + $0x50] sm:$0xff]  }
  0x19   :  { %1656 = vmatpush3.bf16.msra.mxu1 %v1831_v23  ;;  %1635 = vmatprep.subr.bf16.mxu0 %v1832_v24  ;;  %v24_v9 = vld [vmem:[%s2410_s0 + $0x18] sm:$0xff]  ;;  %v1885_v18 = vld [vmem:[%s2411_s1 + $0x10] sm:$0xff]   ;;  %v1888_v21 = vld [vmem:[%s2411_s1 + $0x60] sm:$0xff]  }
  0x1a   :  { %1657 = vmatprep.subr.bf16.mxu1 %v1833_v25  ;;  %v2194_v10 = vcombine.low %v24_v9, %v24_v9  ;;  %v2196_v11 = vcombine.high %v24_v9, %v24_v9  ;;  %v1886_v19 = vld [vmem:[%s2411_s1 + $0x58] sm:$0xff]   ;;  %v1889_v22 = vld [vmem:[%s2411_s1 + $0x20] sm:$0xff]   ;;  %v1890_v23 = vld [vmem:[%s2411_s1 + $0x68] sm:$0xff]  }
  0x1b   :  { %v1887_v20 = vld [vmem:[%s2411_s1 + $0x18] sm:$0xff]   ;;  %v1891_v24 = vld [vmem:[%s2411_s1 + $0x28] sm:$0xff]   ;;  %v1892_v25 = vld [vmem:[%s2411_s1 + $0x70] sm:$0xff]  }
  0x1c   :  { %1636 = vmatpush3.bf16.msra.mxu0 %v1834_v26  ;;  %v1893_v26 = vld [vmem:[%s2411_s1 + $0x30] sm:$0xff]   ;;  %v1899_v32 = vld [vmem:[%s2411_s1 + $0x100] sm:$0xff]   ;;  %v1902_v33 = vld [vmem:[%s2411_s1 + $0x148] sm:$0xff]  }
  0x1d   :  { %1658 = vmatpush3.bf16.msra.mxu1 %v1835_v27  ;;  %1637 = vmatprep.subr.bf16.mxu0 %v1836_v28  ;;  %v1894_v27 = vld [vmem:[%s2411_s1 + $0x78] sm:$0xff]   ;;  %v1900_v9 = vld [vmem:[%s2411_s1 + $0xc8] sm:$0xff]  }
  0x1e   :  { %1659 = vmatprep.subr.bf16.mxu1 %v1837_v29  ;;  %v1895_v28 = vld [vmem:[%s2411_s1 + $0x38] sm:$0xff]   ;;  %v853_v29 = vld [vmem:[%s2412_s3] sm:$0xff] }
  0x20   :  { %1638 = vmatpush3.bf16.msra.mxu0 %v1838_v30  ;;  %v1896_v30 = vld [vmem:[%s2411_s1 + $0xc0] sm:$0xff]  }
  0x21   :  { %1660 = vmatpush3.bf16.msra.mxu1 %v1839_v31  ;;  %1667 = vmatprep.subr.bf16.mxu0 %v1844_v38  ;;  %v1898_v31 = vld [vmem:[%s2411_s1 + $0x140] sm:$0xff]   ;;  %v1907_v38 = vld [vmem:[%s2411_s1 + $0x110] sm:$0xff]  }
  0x22   :  { %1689 = vmatprep.subr.bf16.mxu1 %v1845_v39  ;;  %v1910_v39 = vld [vmem:[%s2411_s1 + $0x158] sm:$0xff]  }
  0x23   :  { %726 = vmatmul.mubr.bf16.vlgmr.msra.gmra.mrb[0].mxu0 %v2078_v34 }
  0x24   :  { %766 = vmatmul.mubr.bf16.vlgmr.msra.gmra.mrb[0].mxu1 %v2082_v36  ;;  %1668 = vmatpush3.bf16.msra.mxu0 %v1846_v40  ;;  %v1911_v40 = vld [vmem:[%s2411_s1 + $0x118] sm:$0xff]  }
  0x25   :  { %1690 = vmatpush3.bf16.msra.mxu1 %v1847_v41  ;;  %1669 = vmatprep.subr.bf16.mxu0 %v1848_v42  ;;  %v1914_v41 = vld [vmem:[%s2411_s1 + $0x160] sm:$0xff]  }
  0x26   :  { %1691 = vmatprep.subr.bf16.mxu1 %v1849_v43  ;;  %805 = vmatprep.mubr.bf16.mxu0 %v1490_v8  ;;  %v1915_v42 = vld [vmem:[%s2411_s1 + $0x120] sm:$0xff]   ;;  %v1918_v43 = vld [vmem:[%s2411_s1 + $0x168] sm:$0xff]  }
  0x27   :  { %845 = vmatprep.mubr.bf16.mxu1 %v2196_v11 }
  0x28   :  { %1670 = vmatpush3.bf16.msra.mxu0 %v1850_v44  ;;  %v1919_v44 = vld [vmem:[%s2411_s1 + $0x128] sm:$0xff]  }
  0x29   :  { %1692 = vmatpush3.bf16.msra.mxu1 %v1851_v45  ;;  %1671 = vmatprep.subr.bf16.mxu0 %v1852_v46  ;;  %v1922_v45 = vld [vmem:[%s2411_s1 + $0x170] sm:$0xff]  }
  0x2a   :  { %1693 = vmatprep.subr.bf16.mxu1 %v1853_v47  ;;  %v1923_v46 = vld [vmem:[%s2411_s1 + $0x130] sm:$0xff]   ;;  %v1926_v47 = vld [vmem:[%s2411_s1 + $0x178] sm:$0xff]  }
  0x2c   :  { %1672 = vmatpush3.bf16.msra.mxu0 %v1854_v48  ;;  %v1927_v48 = vld [vmem:[%s2411_s1 + $0x138] sm:$0xff]  }
  0x2d   :  { %1694 = vmatpush3.bf16.msra.mxu1 %v1855_v49  ;;  %1673 = vmatprep.subr.bf16.mxu0 %v1856_v50 }
  0x2e   :  { %1695 = vmatprep.subr.bf16.mxu1 %v1857_v51 }
  0x30   :  { %1674 = vmatpush3.bf16.msra.mxu0 %v1858_v52 }
  0x31   :  { %1696 = vmatpush3.bf16.msra.mxu1 %v1859_v53  ;;  %1675 = vmatprep.subr.bf16.mxu0 %v1860_v54 }
  0x32   :  { %1697 = vmatprep.subr.bf16.mxu1 %v1861_v55 }
  0x34   :  { %1676 = vmatpush3.bf16.msra.mxu0 %v1862_v56 }
  0x35   :  { %1698 = vmatpush3.bf16.msra.mxu1 %v1863_v57  ;;  %1677 = vmatprep.subr.bf16.mxu0 %v1864_v58 }
  0x36   :  { %1699 = vmatprep.subr.bf16.mxu1 %v1865_v59 }
  0x38   :  { %1678 = vmatpush3.bf16.msra.mxu0 %v1866_v60 }
  0x39   :  { %1700 = vmatpush3.bf16.msra.mxu1 %v1867_v61  ;;  %1679 = vmatprep.subr.bf16.mxu0 %v1868_v62 }
  0x3a   :  { %1701 = vmatprep.subr.bf16.mxu1 %v1869_v63 }
  0x3c   :  { %1680 = vmatpush3.bf16.msra.mxu0 %v1870_v0 }
  0x3d   :  { %1702 = vmatpush3.bf16.msra.mxu1 %v1871_v1  ;;  %1681 = vmatprep.subr.bf16.mxu0 %v1872_v2 }
  0x3e   :  { %1703 = vmatprep.subr.bf16.mxu1 %v1873_v3 }
  0x40   :  { %1682 = vmatpush3.bf16.msra.mxu0 %v1874_v4 }
  0x41   :  { %1704 = vmatpush3.bf16.msra.mxu1 %v1875_v5  ;;  %1801 = vmatprep.subr.mxu0 %v1944_v14 }
  0x42   :  { %1713 = vmatprep.subr.bf16.mxu1 %v1880_v12  ;;  %v1901_v12 = vld [vmem:[%s2411_s1 + $0x88] sm:$0xff]  }
  0x43   :  { %806 = vmatmul.mubr.bf16.vlgmr.msra.gmra.mrb[4].mxu0 %v2189_v7 }
  0x44   :  { %846 = vmatmul.mubr.bf16.vlgmr.msra.gmra.mrb[4].mxu1 %v2194_v10  ;;  %1802 = vmatpush3.msra.mxu0 %v853_v29  ;;  %v1933_v29 = vld [vmem:[%s2411_s1 + $0x190] sm:$0xff]  }
  0x45   :  { %1344 = vmatprep.mubr.bf16.mxu1 %v2080_v35  ;;  %1714 = vmatpush3.bf16.msra.mxu1 %v1881_v13  ;;  %v1906_v35 = vld [vmem:[%s2411_s1 + $0x150] sm:$0xff]  }
  0x46   :  { %1715 = vmatprep.subr.bf16.mxu1 %v1882_v15  ;;  %1803 = vmatprep.mubr.msk.f32.mxu0 %vm1945_vm0, %v1944_v14  ;;  %v1904_v13 = vld [vmem:[%s2411_s1 + $0xd0] sm:$0xff]   ;;  %v1908_v15 = vld [vmem:[%s2411_s1 + $0xd8] sm:$0xff]  }
  0x47   :  { %1735 = vmatprep.subr.bf16.mxu0 %v1896_v30  ;;  %v1905_v14 = vld [vmem:[%s2411_s1 + $0x90] sm:$0xff]   ;;  %v1936_v30 = vld [vmem:[%s2411_s1 + $0x1e0] sm:$0xff]  }
  0x49   :  { %1716 = vmatpush3.bf16.msra.mxu1 %v1883_v16  ;;  %v1912_v16 = vld [vmem:[%s2411_s1 + $0xe0] sm:$0xff]  }
  0x4a   :  { %1717 = vmatprep.subr.bf16.mxu1 %v1884_v17  ;;  %v1913_v17 = vld [vmem:[%s2411_s1 + $0xa0] sm:$0xff]  }
  0x4d   :  { %1718 = vmatpush3.bf16.msra.mxu1 %v1885_v18  ;;  %v1916_v18 = vld [vmem:[%s2411_s1 + $0xe8] sm:$0xff]  }
  0x4e   :  { %1719 = vmatprep.subr.bf16.mxu1 %v1886_v19  ;;  %v1917_v19 = vld [vmem:[%s2411_s1 + $0xa8] sm:$0xff]  }
  0x51   :  { %1720 = vmatpush3.bf16.msra.mxu1 %v1887_v20  ;;  %v1920_v20 = vld [vmem:[%s2411_s1 + $0xf0] sm:$0xff]  }
  0x52   :  { %1721 = vmatprep.subr.bf16.mxu1 %v1888_v21  ;;  %v1921_v21 = vld [vmem:[%s2411_s1 + $0xb0] sm:$0xff]  }
  0x55   :  { %1722 = vmatpush3.bf16.msra.mxu1 %v1889_v22  ;;  %v1924_v22 = vld [vmem:[%s2411_s1 + $0xf8] sm:$0xff]  }
  0x56   :  { %1723 = vmatprep.subr.bf16.mxu1 %v1890_v23  ;;  %v1925_v23 = vld [vmem:[%s2411_s1 + $0xb8] sm:$0xff]  }
  0x59   :  { %1724 = vmatpush3.bf16.msra.mxu1 %v1891_v24  ;;  %v1928_v24 = vld [vmem:[%s2411_s1 + $0x1c0] sm:$0xff]  }
  0x5a   :  { %1725 = vmatprep.subr.bf16.mxu1 %v1892_v25  ;;  %v1929_v25 = vld [vmem:[%s2411_s1 + $0x180] sm:$0xff]  }
  0x5d   :  { %1726 = vmatpush3.bf16.msra.mxu1 %v1893_v26  ;;  %v1930_v26 = vld [vmem:[%s2411_s1 + $0x1c8] sm:$0xff]  }
  0x5e   :  { %1727 = vmatprep.subr.bf16.mxu1 %v1894_v27  ;;  %v1931_v27 = vld [vmem:[%s2411_s1 + $0x188] sm:$0xff]  }
  0x61   :  { %1728 = vmatpush3.bf16.msra.mxu1 %v1895_v28  ;;  %v1932_v28 = vld [vmem:[%s2411_s1 + $0x1d0] sm:$0xff]  }
  0x62   :  { %1757 = vmatprep.subr.bf16.mxu1 %v1898_v31  ;;  %v1937_v31 = vld [vmem:[%s2411_s1 + $0x1a0] sm:$0xff]  }
  0x64   :  { %1345 = vmatmul.mubr.bf16.vlgmr.msra.gmra.mrb[8].mxu1 %v2078_v34  ;;  %v1903_v34 = vld [vmem:[%s2411_s1 + $0x108] sm:$0xff]  }
  0x65   :  { %1424 = vmatprep.mubr.bf16.mxu1 %v1490_v8  ;;  %1758 = vmatpush3.bf16.msra.mxu1 %v1899_v32  ;;  %v1938_v32 = vld [vmem:[%s2411_s1 + $0x1e8] sm:$0xff]  }
  0x66   :  { %1759 = vmatprep.subr.bf16.mxu1 %v1902_v33  ;;  %v1939_v33 = vld [vmem:[%s2411_s1 + $0x1a8] sm:$0xff]  }
  0x69   :  { %1760 = vmatpush3.bf16.msra.mxu1 %v1903_v34  ;;  %v1940_v34 = vld [vmem:[%s2411_s1 + $0x1f0] sm:$0xff]  }
  0x6a   :  { %1761 = vmatprep.subr.bf16.mxu1 %v1906_v35  ;;  %v1941_v35 = vld [vmem:[%s2411_s1 + $0x1b0] sm:$0xff]  }
  0x6d   :  { %1762 = vmatpush3.bf16.msra.mxu1 %v1907_v38  ;;  %v1942_v38 = vld [vmem:[%s2411_s1 + $0x1f8] sm:$0xff]  }
  0x6e   :  { %1763 = vmatprep.subr.bf16.mxu1 %v1910_v39  ;;  %v1943_v39 = vld [vmem:[%s2411_s1 + $0x1b8] sm:$0xff]  }
  0x71   :  { %1764 = vmatpush3.bf16.msra.mxu1 %v1911_v40 }
  0x72   :  { %1765 = vmatprep.subr.bf16.mxu1 %v1914_v41 }
  0x75   :  { %1766 = vmatpush3.bf16.msra.mxu1 %v1915_v42 }
  0x76   :  { %1767 = vmatprep.subr.bf16.mxu1 %v1918_v43 }
  0x79   :  { %1768 = vmatpush3.bf16.msra.mxu1 %v1919_v44 }
  0x7a   :  { %1769 = vmatprep.subr.bf16.mxu1 %v1922_v45 }
  0x7d   :  { %1770 = vmatpush3.bf16.msra.mxu1 %v1923_v46 }
  0x7e   :  { %1771 = vmatprep.subr.bf16.mxu1 %v1926_v47 }
  0x81   :  { %1772 = vmatpush3.bf16.msra.mxu1 %v1927_v48 }
  0x84   :  { %1425 = vmatmul.mubr.bf16.vlgmr.msra.gmra.mrb[12].mxu1 %v2189_v7  ;;  %v1897_v7 = vld [vmem:[%s2411_s1 + $0x80] sm:$0xff]  }
  0xf6   :  { %v1639_v49 = vpop.f32.mrb[0].mxu0 }
  0xf7   :  { %v1661_v50 = vpop.f32.mrb[0].mxu1  ;;  %v1640_v51 = vpop.f32.mrb[1].mxu0 }
  0xf8   :  { %v1662_v52 = vpop.f32.mrb[1].mxu1  ;;  %v1641_v53 = vadd.f32 %v1640_v51, %v1639_v49  ;;  %v1642_v55 = vpop.f32.mrb[2].mxu0 }
  0xf9   :  { %v1663_v54 = vadd.f32 %v1662_v52, %v1661_v50  ;;  %v1664_v56 = vpop.f32.mrb[2].mxu1  ;;  %v1643_v57 = vpop.f32.mrb[3].mxu0 }
  0xfa   :  { %v1665_v58 = vpop.f32.mrb[3].mxu1 }
  0xfb   :  { %v768_v59 = vadd.f32 %v1663_v54, %v1641_v53 }
 0x116   :  { %v1683_v60 = vpop.f32.mrb[4].mxu0 }
 0x117   :  { %v1705_v61 = vpop.f32.mrb[4].mxu1  ;;  %v1684_v62 = vpop.f32.mrb[5].mxu0 }
 0x118   :  { %v1706_v63 = vpop.f32.mrb[5].mxu1  ;;  %v1685_v0 = vadd.f32 %v1684_v62, %v1683_v60  ;;  %v1686_v2 = vpop.f32.mrb[6].mxu0 }
 0x119   :  { %v1707_v1 = vadd.f32 %v1706_v63, %v1705_v61  ;;  %v1708_v3 = vpop.f32.mrb[6].mxu1  ;;  %v1687_v4 = vpop.f32.mrb[7].mxu0  ;;  %v1622_v63 = vld [vmem:[%s2413_s4] ss:$0 sm:$0xff] }
 0x11a   :  { %v1709_v5 = vpop.f32.mrb[7].mxu1  ;;  %v808_v6 = vadd.f32 %v1685_v0, %v768_v59 }
 0x11c   :  { %v848_v8 = vadd.f32 %v1707_v1, %v808_v6 }
 0x11e   :  { %1804 = vmatmul.mubr.msk.f32.vlgmr.msra.gmra.mrb[8].mxu0 %vm854_vm1, %v848_v8 }
 0x11f   :  { %1736 = vmatpush3.bf16.msra.mxu0 %v1897_v7  ;;  %1384 = vmatprep.mubr.bf16.mxu0 %v2084_v37  ;;  %v1909_v37 = vld [vmem:[%s2411_s1 + $0x98] sm:$0xff]  }
 0x120   :  { %1737 = vmatprep.subr.bf16.mxu0 %v1900_v9 }
 0x123   :  { %1738 = vmatpush3.bf16.msra.mxu0 %v1901_v12 }
 0x124   :  { %1739 = vmatprep.subr.bf16.mxu0 %v1904_v13 }
 0x127   :  { %1740 = vmatpush3.bf16.msra.mxu0 %v1905_v14 }
 0x128   :  { %1741 = vmatprep.subr.bf16.mxu0 %v1908_v15 }
 0x12b   :  { %1742 = vmatpush3.bf16.msra.mxu0 %v1909_v37 }
 0x12c   :  { %1743 = vmatprep.subr.bf16.mxu0 %v1912_v16 }
 0x12f   :  { %1744 = vmatpush3.bf16.msra.mxu0 %v1913_v17 }
 0x130   :  { %1745 = vmatprep.subr.bf16.mxu0 %v1916_v18 }
 0x133   :  { %1746 = vmatpush3.bf16.msra.mxu0 %v1917_v19 }
 0x134   :  { %1747 = vmatprep.subr.bf16.mxu0 %v1920_v20 }
 0x137   :  { %1748 = vmatpush3.bf16.msra.mxu0 %v1921_v21  ;;  %v1729_v40 = vpop.f32.mrb[8].mxu1 }
 0x138   :  { %1749 = vmatprep.subr.bf16.mxu0 %v1924_v22  ;;  %v1730_v41 = vpop.f32.mrb[9].mxu1 }
 0x139   :  { %v1731_v42 = vadd.f32 %v1730_v41, %v1729_v40  ;;  %v1732_v43 = vpop.f32.mrb[10].mxu1 }
 0x13a   :  { %v1733_v44 = vpop.f32.mrb[11].mxu1 }
 0x13b   :  { %1750 = vmatpush3.bf16.msra.mxu0 %v1925_v23 }
 0x13c   :  { %1779 = vmatprep.subr.bf16.mxu0 %v1928_v24 }
 0x13e   :  { %1385 = vmatmul.mubr.bf16.vlgmr.msra.gmra.mrb[12].mxu0 %v2082_v36  ;;  %v1934_v36 = vld [vmem:[%s2411_s1 + $0x1d8] sm:$0xff]  }
 0x13f   :  { %1780 = vmatpush3.bf16.msra.mxu0 %v1929_v25  ;;  %1464 = vmatprep.mubr.bf16.mxu0 %v2196_v11  ;;  %v1935_v11 = vld [vmem:[%s2411_s1 + $0x198] sm:$0xff]  }
 0x140   :  { %1781 = vmatprep.subr.bf16.mxu0 %v1930_v26 }
 0x143   :  { %1782 = vmatpush3.bf16.msra.mxu0 %v1931_v27 }
 0x144   :  { %1783 = vmatprep.subr.bf16.mxu0 %v1932_v28 }
 0x147   :  { %1784 = vmatpush3.bf16.msra.mxu0 %v1933_v29 }
 0x148   :  { %1785 = vmatprep.subr.bf16.mxu0 %v1934_v36 }
 0x14b   :  { %1786 = vmatpush3.bf16.msra.mxu0 %v1935_v11 }
 0x14c   :  { %1787 = vmatprep.subr.bf16.mxu0 %v1936_v30 }
 0x14f   :  { %1788 = vmatpush3.bf16.msra.mxu0 %v1937_v31 }
 0x150   :  { %1789 = vmatprep.subr.bf16.mxu0 %v1938_v32 }
 0x153   :  { %1790 = vmatpush3.bf16.msra.mxu0 %v1939_v33 }
 0x154   :  { %1791 = vmatprep.subr.bf16.mxu0 %v1940_v34 }
 0x157   :  { %1792 = vmatpush3.bf16.msra.mxu0 %v1941_v35  ;;  %v1773_v45 = vpop.f32.mrb[12].mxu1 }
 0x158   :  { %1793 = vmatprep.subr.bf16.mxu0 %v1942_v38  ;;  %v1774_v46 = vpop.f32.mrb[13].mxu1 }
 0x159   :  { %v1775_v47 = vadd.f32 %v1774_v46, %v1773_v45  ;;  %v1776_v48 = vpop.f32.mrb[14].mxu1 }
 0x15a   :  { %v1777_v49 = vpop.f32.mrb[15].mxu1 }
 0x15b   :  { %1794 = vmatpush3.bf16.msra.mxu0 %v1943_v39 }
 0x15e   :  { %1465 = vmatmul.mubr.bf16.vlgmr.msra.gmra.mrb[16].mxu0 %v2194_v10 }
 0x1f1   :  { %v924_v50 = vpop.f32.mrb[8].mxu0 }
 0x1f2   :  { %v1347_v51 = vadd.f32 %v1731_v42, %v924_v50  ;;  %v1805_v52 = vpop.f32.mrb[9].mxu0 }
 0x211   :  { %v1751_v53 = vpop.f32.mrb[12].mxu0 }
 0x212   :  { %v1752_v54 = vpop.f32.mrb[13].mxu0 }
 0x213   :  { %v1753_v55 = vadd.f32 %v1752_v54, %v1751_v53  ;;  %v1754_v56 = vpop.f32.mrb[14].mxu0 }
 0x214   :  { %v1755_v57 = vpop.f32.mrb[15].mxu0 }
 0x215   :  { %v1387_v58 = vadd.f32 %v1753_v55, %v1347_v51 }
 0x217   :  { %v1427_v10 = vadd.f32 %v1775_v47, %v1387_v58 }
 0x231   :  { %v1795_v59 = vpop.f32.mrb[16].mxu0 }
 0x232   :  { %v1796_v60 = vpop.f32.mrb[17].mxu0 }
 0x233   :  { %v1797_v61 = vadd.f32 %v1796_v60, %v1795_v59  ;;  %v1798_v62 = vpop.f32.mrb[18].mxu0 }
 0x234   :  { %v1799_v0 = vpop.f32.mrb[19].mxu0 }
 0x235   :  { %v1467_v1 = vadd.f32 %v1797_v61, %v1427_v10 }
 0x237   :  { %v1479_v2 = vadd.f32 %v1622_v63, %v1467_v1 }
 0x239   :  { %1480 = vst [vmem:[%s2414_s5] sm:$0xff] %v1479_v2 }

</bundles_post_ra>
